<compile_context>
chip_gen: v7x
topology: tpu7x:2x2x1
jax: 0.10.0
libtpu: 0.0.40
codegen_flags: <defaults>
</compile_context>

<pallas_src>
import jax
import jax.numpy as jnp
from jax.experimental import pallas as pl
from jax.experimental.pallas import tpu as pltpu

# ---- hyper-params consistent with DQNSolver kwargs (small synthetic config) ----
B = 2              # batch_size
C = 4              # num_features (conv input channels)
WIN = 16           # window_size
S = 4              # stride  -> GRU time steps
WD = WIN // S      # width seen by the [1, K] conv
F = 8              # filter_sizes = [8, 8]   (out_channels = filter_sizes[1])
K = 3              # kernel_sizes = [3, 3]   (kernel = [1, kernel_sizes[1]])
PAD = (K - 1) // 2
H = 32             # gru_cell_size (== hidden_size[0]); gru_num_cells = 1
GH = 3 * H         # true GRU gate width (r|z|n)
GP = 128           # gate width zero-padded to a full 128-lane vreg
A = 4              # num_actions
NEG = 0.01         # LeakyReLU default negative slope
N = S * B          # total (time, batch) rows processed by the conv block
LANES = 128

# weight-slab row offsets (all multiples of 16 -> bf16 sublane-tile aligned sub-views)
ROW_WC1 = 0                    # (WD*C, WD*F) = (16, 32)
ROW_WC2 = ROW_WC1 + WD * C     # 16,  (WD*F, WD*F) = (32, 32)
ROW_WIH = ROW_WC2 + WD * F     # 48,  (WD*F, GP)   = (32, 128)
ROW_WHH = ROW_WIH + WD * F     # 80,  (H, GP)      = (32, 128)
ROW_WM1 = ROW_WHH + H          # 112, (H, H)       = (32, 32)
ROW_WM2 = ROW_WM1 + H          # 144, (H, A)       = (32, 4)
W_ROWS = ROW_WM2 + H           # 176 rows total (multiple of 16)


def _leaky(x):
    return jnp.where(x >= 0, x, NEG * x)


# ---------------- single fused kernel: conv block + GRU + MLP + softmax ----------------
def dqn_kernel(x_ref, w_ref, b_ref, out_ref):
    bf16 = jnp.bfloat16
    f32 = jnp.float32

    # Static sub-views of the two packed slabs (free; no extra DMA descriptors).
    wc1 = w_ref[ROW_WC1:ROW_WC1 + WD * C, 0:WD * F]     # (16, 32)  conv1 folded matmul
    wc2 = w_ref[ROW_WC2:ROW_WC2 + WD * F, 0:WD * F]     # (32, 32)  conv2 folded matmul
    wih = w_ref[ROW_WIH:ROW_WIH + WD * F, 0:GP]         # (32, 128) GRU W_ih (r|z|n|pad)
    whh = w_ref[ROW_WHH:ROW_WHH + H, 0:GP]              # (32, 128) GRU W_hh (r|z|n|pad)
    wm1 = w_ref[ROW_WM1:ROW_WM1 + H, 0:H]               # (32, 32)
    wm2 = w_ref[ROW_WM2:ROW_WM2 + H, 0:A]               # (32, 4)
    b1 = b_ref[0:1, 0:WD * F]
    b2 = b_ref[1:2, 0:WD * F]
    bih = b_ref[2:3, 0:GP]
    bhh = b_ref[3:4, 0:GP]
    bm1 = b_ref[4:5, 0:H]
    bm2 = b_ref[5:6, 0:A]

    # conv layer 1 + LeakyReLU   ([1,K] 'same' conv folded into a dense (WD*C, WD*F) matmul)
    h1 = _leaky(jnp.dot(x_ref[...], wc1, preferred_element_type=f32) + b1)
    # conv layer 2 + LeakyReLU   (dense (WD*F, WD*F) matmul, padding baked in)
    h2 = _leaky(jnp.dot(h1.astype(bf16), wc2, preferred_element_type=f32) + b2)

    # GRU input projection for every (s, b) row at once: (S*B, WD*F) @ (WD*F, GP)
    gi = jnp.dot(h2.astype(bf16), wih, preferred_element_type=f32) + bih

    # ---- GRU recurrence (time-major, short static unroll) ----
    # step 0: h == 0  =>  gh == bhh broadcast; skip the recurrent matmul entirely.
    gi0 = gi[0:B, :]
    r = jax.nn.sigmoid(gi0[:, 0:H] + bhh[:, 0:H])
    z = jax.nn.sigmoid(gi0[:, H:2 * H] + bhh[:, H:2 * H])
    n = jnp.tanh(gi0[:, 2 * H:3 * H] + r * bhh[:, 2 * H:3 * H])
    h = (1.0 - z) * n
    # steps 1..S-1: one fused (H, 3H) recurrent matmul per step.
    for s in range(1, S):
        gi_s = gi[s * B:(s + 1) * B, :]
        gh = jnp.dot(h.astype(bf16), whh, preferred_element_type=f32) + bhh
        r = jax.nn.sigmoid(gi_s[:, 0:H] + gh[:, 0:H])
        z = jax.nn.sigmoid(gi_s[:, H:2 * H] + gh[:, H:2 * H])
        n = jnp.tanh(gi_s[:, 2 * H:3 * H] + r * gh[:, 2 * H:3 * H])
        h = (1.0 - z) * n + z * h

    # MLP: Linear(H,H) + LeakyReLU (+Dropout=id), then Linear(H,A) + Softmax(dim=1)
    m = _leaky(jnp.dot(h.astype(bf16), wm1, preferred_element_type=f32) + bm1)
    logits = jnp.dot(m.astype(bf16), wm2, preferred_element_type=f32) + bm2
    logits = logits - jnp.max(logits, axis=1, keepdims=True)
    e = jnp.exp(logits)
    out_ref[...] = e * pl.reciprocal(jnp.sum(e, axis=1, keepdims=True), approx=True)


# ---------------- one-time weight packing (outside the jitted forward) ----------------
def pack_params(p):
    def conv_as_matmul(wk, cin):
        # Fold a [1,K] 'same' conv (weights wk: (K, cin, F)) into a dense matmul weight
        # acting on a whole flattened (WD, cin) row; zero padding -> zero blocks.
        wm = jnp.zeros((WD * cin, WD * F), jnp.float32)
        for wo in range(WD):
            for k in range(K):
                wi = wo + k - PAD
                if 0 <= wi < WD:
                    wm = wm.at[wi * cin:(wi + 1) * cin, wo * F:(wo + 1) * F].set(wk[k])
        return wm

    def put(slab, r0, mat):
        return slab.at[r0:r0 + mat.shape[0], 0:mat.shape[1]].set(mat)

    # torch GRU W_ih is (3H, F*WD) with column f*WD + w; repack to (WD*F, 3H), row w*F + f
    wih = p['w_ih'].T.reshape(F, WD, GH).transpose(1, 0, 2).reshape(WD * F, GH)

    # single lane-dense bf16 weight slab (one DMA descriptor)
    w = jnp.zeros((W_ROWS, LANES), jnp.float32)
    w = put(w, ROW_WC1, conv_as_matmul(p['w1'], C))     # (16, 32)
    w = put(w, ROW_WC2, conv_as_matmul(p['w2'], F))     # (32, 32)
    w = put(w, ROW_WIH, wih)                            # (32, 96) -> cols 96:128 stay zero
    w = put(w, ROW_WHH, p['w_hh'].T)                    # (32, 96) gate order r|z|n
    w = put(w, ROW_WM1, p['wm1'])                       # (32, 32)
    w = put(w, ROW_WM2, p['wm2'])                       # (32, 4)
    w = w.astype(jnp.bfloat16)

    # single f32 bias slab (one vreg tile; one DMA descriptor)
    b = jnp.zeros((8, LANES), jnp.float32)
    b = put(b, 0, jnp.tile(p['b1'], (1, WD)))           # (1, 32), column order w*F + f
    b = put(b, 1, jnp.tile(p['b2'], (1, WD)))
    b = put(b, 2, p['b_ih'].reshape(1, GH))
    b = put(b, 3, p['b_hh'].reshape(1, GH))
    b = put(b, 4, p['bm1'])
    b = put(b, 5, p['bm2'])
    return {'w': w, 'b': b}


def prepare_input(x):
    # One-time relayout where x is produced (outside the jitted forward, per perf review):
    # (B, WIN, C) -> time-major rows (S*B, WD*C); row index s*B + b, column w*C + c; bf16.
    xf = x.reshape(B, S, WD * C).transpose(1, 0, 2).reshape(N, WD * C)
    return xf.astype(jnp.bfloat16)


# ---------------- wrapper ----------------
@jax.jit
def dqn_forward(xf, w_slab, b_slab):
    vmem = pl.BlockSpec(memory_space=pltpu.MemorySpace.VMEM)
    return pl.pallas_call(
        dqn_kernel,
        out_shape=jax.ShapeDtypeStruct((B, A), jnp.float32),
        in_specs=[vmem, vmem, vmem],
        out_specs=vmem,
    )(xf, w_slab, b_slab)


# ---------------- deterministic parameter init (synthetic) ----------------
def init_params(key):
    ks = jax.random.split(key, 12)
    sc = 0.1
    return {
        'w1':   sc * jax.random.normal(ks[0], (K, C, F), jnp.float32),   # conv1 [k,c,f]
        'b1':   sc * jax.random.normal(ks[1], (1, F), jnp.float32),
        'w2':   sc * jax.random.normal(ks[2], (K, F, F), jnp.float32),   # conv2 [k,c,f]
        'b2':   sc * jax.random.normal(ks[3], (1, F), jnp.float32),
        'w_ih': sc * jax.random.normal(ks[4], (GH, F * WD), jnp.float32),  # torch GRU layout
        'b_ih': sc * jax.random.normal(ks[5], (GH,), jnp.float32),
        'w_hh': sc * jax.random.normal(ks[6], (GH, H), jnp.float32),
        'b_hh': sc * jax.random.normal(ks[7], (GH,), jnp.float32),
        'wm1':  sc * jax.random.normal(ks[8], (H, H), jnp.float32),      # (in, out)
        'bm1':  sc * jax.random.normal(ks[9], (1, H), jnp.float32),
        'wm2':  sc * jax.random.normal(ks[10], (H, A), jnp.float32),     # (in, out)
        'bm2':  sc * jax.random.normal(ks[11], (1, A), jnp.float32),
    }


# ---------------- pure-JAX reference mirroring the PyTorch forward ----------------
def reference_forward(x, p):
    b = x.shape[0]
    y = x.reshape(b, S, WD, C).transpose(0, 3, 1, 2)        # NCHW (B, C, S, WD)

    def conv_block(inp, wk, bias):
        xp = jnp.pad(inp, ((0, 0), (0, 0), (0, 0), (PAD, PAD)))
        out = jnp.zeros((b, F, S, WD), jnp.float32)
        for k in range(K):
            out = out + jnp.einsum('bcsw,cf->bfsw', xp[:, :, :, k:k + WD], wk[k])
        out = out + bias.reshape(1, F, 1, 1)
        return jnp.where(out >= 0, out, NEG * out)

    h1 = conv_block(y, p['w1'], p['b1'])
    h2 = conv_block(h1, p['w2'], p['b2'])
    cr = h2.transpose(0, 2, 1, 3).reshape(b, S, F * WD)

    h = jnp.zeros((b, H), jnp.float32)
    for s in range(S):
        gi = cr[:, s, :] @ p['w_ih'].T + p['b_ih']
        gh = h @ p['w_hh'].T + p['b_hh']
        r = jax.nn.sigmoid(gi[:, :H] + gh[:, :H])
        z = jax.nn.sigmoid(gi[:, H:2 * H] + gh[:, H:2 * H])
        nn_ = jnp.tanh(gi[:, 2 * H:] + r * gh[:, 2 * H:])
        h = (1.0 - z) * nn_ + z * h

    m = h @ p['wm1'] + p['bm1']
    m = jnp.where(m >= 0, m, NEG * m)
    logits = m @ p['wm2'] + p['bm2']
    return jax.nn.softmax(logits, axis=1)


if __name__ == "__main__":
    key = jax.random.PRNGKey(0)
    kx, kp = jax.random.split(key)
    x = jax.random.normal(kx, (B, WIN, C), jnp.float32)
    params = init_params(kp)
    packed = pack_params(params)      # one-time pre-packing (2 lane-dense slabs)
    xf = prepare_input(x)             # one-time time-major relayout + bf16 cast

    out = dqn_forward(xf, packed['w'], packed['b'])
    out = jax.block_until_ready(out)
    ref = reference_forward(x, params)

    assert out.shape == (B, A)
    assert bool(jnp.all(jnp.isfinite(out)))
    assert bool(jnp.allclose(out, ref, atol=2e-2, rtol=2e-2)), \
        f"max abs diff {float(jnp.max(jnp.abs(out - ref)))}"
    print("KERNEL_OK")
</pallas_src>

<mosaic_0001>
module attributes {stable_mosaic.version = 11 : i64} {
  func.func @dqn_kernel(%arg0: memref<8x16xbf16, #tpu.memory_space<vmem>>, %arg1: memref<176x128xbf16, #tpu.memory_space<vmem>>, %arg2: memref<8x128xf32, #tpu.memory_space<vmem>>, %arg3: memref<2x4xf32, #tpu.memory_space<vmem>>) attributes {dimension_semantics = [], scalar_prefetch = 0 : i64, scratch_operands = 0 : i64, tpu.core_type = #tpu.core_type<tc>} {
    %c0 = arith.constant 0 : index
    %c0_0 = arith.constant 0 : index
    %0 = vector.load %arg1[%c0, %c0_0] : memref<176x128xbf16, #tpu.memory_space<vmem>>, vector<16x32xbf16>
    %c16 = arith.constant 16 : index
    %c0_1 = arith.constant 0 : index
    %1 = vector.load %arg1[%c16, %c0_1] : memref<176x128xbf16, #tpu.memory_space<vmem>>, vector<32x32xbf16>
    %c48 = arith.constant 48 : index
    %c0_2 = arith.constant 0 : index
    %2 = vector.load %arg1[%c48, %c0_2] : memref<176x128xbf16, #tpu.memory_space<vmem>>, vector<32x128xbf16>
    %c80 = arith.constant 80 : index
    %c0_3 = arith.constant 0 : index
    %3 = vector.load %arg1[%c80, %c0_3] : memref<176x128xbf16, #tpu.memory_space<vmem>>, vector<32x128xbf16>
    %c112 = arith.constant 112 : index
    %c0_4 = arith.constant 0 : index
    %4 = vector.load %arg1[%c112, %c0_4] : memref<176x128xbf16, #tpu.memory_space<vmem>>, vector<32x32xbf16>
    %c144 = arith.constant 144 : index
    %c0_5 = arith.constant 0 : index
    %5 = vector.load %arg1[%c144, %c0_5] : memref<176x128xbf16, #tpu.memory_space<vmem>>, vector<32x4xbf16>
    %c0_6 = arith.constant 0 : index
    %c0_7 = arith.constant 0 : index
    %6 = vector.load %arg2[%c0_6, %c0_7] : memref<8x128xf32, #tpu.memory_space<vmem>>, vector<1x32xf32>
    %c1 = arith.constant 1 : index
    %c0_8 = arith.constant 0 : index
    %7 = vector.load %arg2[%c1, %c0_8] : memref<8x128xf32, #tpu.memory_space<vmem>>, vector<1x32xf32>
    %c2 = arith.constant 2 : index
    %c0_9 = arith.constant 0 : index
    %8 = vector.load %arg2[%c2, %c0_9] : memref<8x128xf32, #tpu.memory_space<vmem>>, vector<1x128xf32>
    %c3 = arith.constant 3 : index
    %c0_10 = arith.constant 0 : index
    %9 = vector.load %arg2[%c3, %c0_10] : memref<8x128xf32, #tpu.memory_space<vmem>>, vector<1x128xf32>
    %c4 = arith.constant 4 : index
    %c0_11 = arith.constant 0 : index
    %10 = vector.load %arg2[%c4, %c0_11] : memref<8x128xf32, #tpu.memory_space<vmem>>, vector<1x32xf32>
    %c5 = arith.constant 5 : index
    %c0_12 = arith.constant 0 : index
    %11 = vector.load %arg2[%c5, %c0_12] : memref<8x128xf32, #tpu.memory_space<vmem>>, vector<1x4xf32>
    %c0_13 = arith.constant 0 : index
    %c0_14 = arith.constant 0 : index
    %12 = vector.load %arg0[%c0_13, %c0_14] : memref<8x16xbf16, #tpu.memory_space<vmem>>, vector<8x16xbf16>
    %cst = arith.constant dense<0.000000e+00> : vector<8x32xf32>
    %13 = tpu.matmul %12, %0, %cst {dimension_numbers = #tpu.dot_dimension_numbers<[1], [0], [0], [1], [0, 0, 1, 1], [], []>} : vector<8x16xbf16>, vector<16x32xbf16>, vector<8x32xf32> -> vector<8x32xf32>
    %14 = vector.broadcast %6 : vector<1x32xf32> to vector<8x32xf32>
    %15 = arith.addf %13, %14 : vector<8x32xf32>
    %cst_15 = arith.constant 0.000000e+00 : f32
    %16 = vector.broadcast %cst_15 : f32 to vector<8x32xf32>
    %17 = arith.cmpf oge, %15, %16 : vector<8x32xf32>
    %cst_16 = arith.constant 0.00999999977 : f32
    %18 = vector.broadcast %cst_16 : f32 to vector<8x32xf32>
    %19 = arith.mulf %18, %15 : vector<8x32xf32>
    %20 = arith.select %17, %15, %19 : vector<8x32xi1>, vector<8x32xf32>
    %21 = arith.truncf %20 : vector<8x32xf32> to vector<8x32xbf16>
    %cst_17 = arith.constant dense<0.000000e+00> : vector<8x32xf32>
    %22 = tpu.matmul %21, %1, %cst_17 {dimension_numbers = #tpu.dot_dimension_numbers<[1], [0], [0], [1], [0, 0, 1, 1], [], []>} : vector<8x32xbf16>, vector<32x32xbf16>, vector<8x32xf32> -> vector<8x32xf32>
    %23 = vector.broadcast %7 : vector<1x32xf32> to vector<8x32xf32>
    %24 = arith.addf %22, %23 : vector<8x32xf32>
    %cst_18 = arith.constant 0.000000e+00 : f32
    %25 = vector.broadcast %cst_18 : f32 to vector<8x32xf32>
    %26 = arith.cmpf oge, %24, %25 : vector<8x32xf32>
    %cst_19 = arith.constant 0.00999999977 : f32
    %27 = vector.broadcast %cst_19 : f32 to vector<8x32xf32>
    %28 = arith.mulf %27, %24 : vector<8x32xf32>
    %29 = arith.select %26, %24, %28 : vector<8x32xi1>, vector<8x32xf32>
    %30 = arith.truncf %29 : vector<8x32xf32> to vector<8x32xbf16>
    %cst_20 = arith.constant dense<0.000000e+00> : vector<8x128xf32>
    %31 = tpu.matmul %30, %2, %cst_20 {dimension_numbers = #tpu.dot_dimension_numbers<[1], [0], [0], [1], [0, 0, 1, 1], [], []>} : vector<8x32xbf16>, vector<32x128xbf16>, vector<8x128xf32> -> vector<8x128xf32>
    %32 = vector.broadcast %8 : vector<1x128xf32> to vector<8x128xf32>
    %33 = arith.addf %31, %32 : vector<8x128xf32>
    %34 = vector.extract_strided_slice %33 {offsets = [0, 0], sizes = [2, 128], strides = [1, 1]} : vector<8x128xf32> to vector<2x128xf32>
    %35 = vector.extract_strided_slice %34 {offsets = [0, 0], sizes = [2, 32], strides = [1, 1]} : vector<2x128xf32> to vector<2x32xf32>
    %36 = vector.extract_strided_slice %9 {offsets = [0, 0], sizes = [1, 32], strides = [1, 1]} : vector<1x128xf32> to vector<1x32xf32>
    %37 = vector.broadcast %36 : vector<1x32xf32> to vector<2x32xf32>
    %38 = arith.addf %35, %37 : vector<2x32xf32>
    %39 = arith.negf %38 : vector<2x32xf32>
    %40 = math.exp %39 : vector<2x32xf32>
    %cst_21 = arith.constant 1.000000e+00 : f32
    %41 = vector.broadcast %cst_21 : f32 to vector<2x32xf32>
    %42 = arith.addf %41, %40 : vector<2x32xf32>
    %43 = arith.divf %41, %42 : vector<2x32xf32>
    %44 = vector.extract_strided_slice %34 {offsets = [0, 32], sizes = [2, 32], strides = [1, 1]} : vector<2x128xf32> to vector<2x32xf32>
    %45 = vector.extract_strided_slice %9 {offsets = [0, 32], sizes = [1, 32], strides = [1, 1]} : vector<1x128xf32> to vector<1x32xf32>
    %46 = vector.broadcast %45 : vector<1x32xf32> to vector<2x32xf32>
    %47 = arith.addf %44, %46 : vector<2x32xf32>
    %48 = arith.negf %47 : vector<2x32xf32>
    %49 = math.exp %48 : vector<2x32xf32>
    %cst_22 = arith.constant 1.000000e+00 : f32
    %50 = vector.broadcast %cst_22 : f32 to vector<2x32xf32>
    %51 = arith.addf %50, %49 : vector<2x32xf32>
    %52 = arith.divf %50, %51 : vector<2x32xf32>
    %53 = vector.extract_strided_slice %34 {offsets = [0, 64], sizes = [2, 32], strides = [1, 1]} : vector<2x128xf32> to vector<2x32xf32>
    %54 = vector.extract_strided_slice %9 {offsets = [0, 64], sizes = [1, 32], strides = [1, 1]} : vector<1x128xf32> to vector<1x32xf32>
    %55 = vector.broadcast %54 : vector<1x32xf32> to vector<2x32xf32>
    %56 = arith.mulf %43, %55 : vector<2x32xf32>
    %57 = arith.addf %53, %56 : vector<2x32xf32>
    %58 = math.tanh %57 : vector<2x32xf32>
    %cst_23 = arith.constant 1.000000e+00 : f32
    %59 = vector.broadcast %cst_23 : f32 to vector<2x32xf32>
    %60 = arith.subf %59, %52 : vector<2x32xf32>
    %61 = arith.mulf %60, %58 : vector<2x32xf32>
    %62 = vector.extract_strided_slice %33 {offsets = [2, 0], sizes = [2, 128], strides = [1, 1]} : vector<8x128xf32> to vector<2x128xf32>
    %63 = arith.truncf %61 : vector<2x32xf32> to vector<2x32xbf16>
    %cst_24 = arith.constant dense<0.000000e+00> : vector<2x128xf32>
    %64 = tpu.matmul %63, %3, %cst_24 {dimension_numbers = #tpu.dot_dimension_numbers<[1], [0], [0], [1], [0, 0, 1, 1], [], []>} : vector<2x32xbf16>, vector<32x128xbf16>, vector<2x128xf32> -> vector<2x128xf32>
    %65 = vector.broadcast %9 : vector<1x128xf32> to vector<2x128xf32>
    %66 = arith.addf %64, %65 : vector<2x128xf32>
    %67 = vector.extract_strided_slice %62 {offsets = [0, 0], sizes = [2, 32], strides = [1, 1]} : vector<2x128xf32> to vector<2x32xf32>
    %68 = vector.extract_strided_slice %66 {offsets = [0, 0], sizes = [2, 32], strides = [1, 1]} : vector<2x128xf32> to vector<2x32xf32>
    %69 = arith.addf %67, %68 : vector<2x32xf32>
    %70 = arith.negf %69 : vector<2x32xf32>
    %71 = math.exp %70 : vector<2x32xf32>
    %cst_25 = arith.constant 1.000000e+00 : f32
    %72 = vector.broadcast %cst_25 : f32 to vector<2x32xf32>
    %73 = arith.addf %72, %71 : vector<2x32xf32>
    %74 = arith.divf %72, %73 : vector<2x32xf32>
    %75 = vector.extract_strided_slice %62 {offsets = [0, 32], sizes = [2, 32], strides = [1, 1]} : vector<2x128xf32> to vector<2x32xf32>
    %76 = vector.extract_strided_slice %66 {offsets = [0, 32], sizes = [2, 32], strides = [1, 1]} : vector<2x128xf32> to vector<2x32xf32>
    %77 = arith.addf %75, %76 : vector<2x32xf32>
    %78 = arith.negf %77 : vector<2x32xf32>
    %79 = math.exp %78 : vector<2x32xf32>
    %cst_26 = arith.constant 1.000000e+00 : f32
    %80 = vector.broadcast %cst_26 : f32 to vector<2x32xf32>
    %81 = arith.addf %80, %79 : vector<2x32xf32>
    %82 = arith.divf %80, %81 : vector<2x32xf32>
    %83 = vector.extract_strided_slice %62 {offsets = [0, 64], sizes = [2, 32], strides = [1, 1]} : vector<2x128xf32> to vector<2x32xf32>
    %84 = vector.extract_strided_slice %66 {offsets = [0, 64], sizes = [2, 32], strides = [1, 1]} : vector<2x128xf32> to vector<2x32xf32>
    %85 = arith.mulf %74, %84 : vector<2x32xf32>
    %86 = arith.addf %83, %85 : vector<2x32xf32>
    %87 = math.tanh %86 : vector<2x32xf32>
    %cst_27 = arith.constant 1.000000e+00 : f32
    %88 = vector.broadcast %cst_27 : f32 to vector<2x32xf32>
    %89 = arith.subf %88, %82 : vector<2x32xf32>
    %90 = arith.mulf %89, %87 : vector<2x32xf32>
    %91 = arith.mulf %82, %61 : vector<2x32xf32>
    %92 = arith.addf %90, %91 : vector<2x32xf32>
    %93 = vector.extract_strided_slice %33 {offsets = [4, 0], sizes = [2, 128], strides = [1, 1]} : vector<8x128xf32> to vector<2x128xf32>
    %94 = arith.truncf %92 : vector<2x32xf32> to vector<2x32xbf16>
    %cst_28 = arith.constant dense<0.000000e+00> : vector<2x128xf32>
    %95 = tpu.matmul %94, %3, %cst_28 {dimension_numbers = #tpu.dot_dimension_numbers<[1], [0], [0], [1], [0, 0, 1, 1], [], []>} : vector<2x32xbf16>, vector<32x128xbf16>, vector<2x128xf32> -> vector<2x128xf32>
    %96 = vector.broadcast %9 : vector<1x128xf32> to vector<2x128xf32>
    %97 = arith.addf %95, %96 : vector<2x128xf32>
    %98 = vector.extract_strided_slice %93 {offsets = [0, 0], sizes = [2, 32], strides = [1, 1]} : vector<2x128xf32> to vector<2x32xf32>
    %99 = vector.extract_strided_slice %97 {offsets = [0, 0], sizes = [2, 32], strides = [1, 1]} : vector<2x128xf32> to vector<2x32xf32>
    %100 = arith.addf %98, %99 : vector<2x32xf32>
    %101 = arith.negf %100 : vector<2x32xf32>
    %102 = math.exp %101 : vector<2x32xf32>
    %cst_29 = arith.constant 1.000000e+00 : f32
    %103 = vector.broadcast %cst_29 : f32 to vector<2x32xf32>
    %104 = arith.addf %103, %102 : vector<2x32xf32>
    %105 = arith.divf %103, %104 : vector<2x32xf32>
    %106 = vector.extract_strided_slice %93 {offsets = [0, 32], sizes = [2, 32], strides = [1, 1]} : vector<2x128xf32> to vector<2x32xf32>
    %107 = vector.extract_strided_slice %97 {offsets = [0, 32], sizes = [2, 32], strides = [1, 1]} : vector<2x128xf32> to vector<2x32xf32>
    %108 = arith.addf %106, %107 : vector<2x32xf32>
    %109 = arith.negf %108 : vector<2x32xf32>
    %110 = math.exp %109 : vector<2x32xf32>
    %cst_30 = arith.constant 1.000000e+00 : f32
    %111 = vector.broadcast %cst_30 : f32 to vector<2x32xf32>
    %112 = arith.addf %111, %110 : vector<2x32xf32>
    %113 = arith.divf %111, %112 : vector<2x32xf32>
    %114 = vector.extract_strided_slice %93 {offsets = [0, 64], sizes = [2, 32], strides = [1, 1]} : vector<2x128xf32> to vector<2x32xf32>
    %115 = vector.extract_strided_slice %97 {offsets = [0, 64], sizes = [2, 32], strides = [1, 1]} : vector<2x128xf32> to vector<2x32xf32>
    %116 = arith.mulf %105, %115 : vector<2x32xf32>
    %117 = arith.addf %114, %116 : vector<2x32xf32>
    %118 = math.tanh %117 : vector<2x32xf32>
    %cst_31 = arith.constant 1.000000e+00 : f32
    %119 = vector.broadcast %cst_31 : f32 to vector<2x32xf32>
    %120 = arith.subf %119, %113 : vector<2x32xf32>
    %121 = arith.mulf %120, %118 : vector<2x32xf32>
    %122 = arith.mulf %113, %92 : vector<2x32xf32>
    %123 = arith.addf %121, %122 : vector<2x32xf32>
    %124 = vector.extract_strided_slice %33 {offsets = [6, 0], sizes = [2, 128], strides = [1, 1]} : vector<8x128xf32> to vector<2x128xf32>
    %125 = arith.truncf %123 : vector<2x32xf32> to vector<2x32xbf16>
    %cst_32 = arith.constant dense<0.000000e+00> : vector<2x128xf32>
    %126 = tpu.matmul %125, %3, %cst_32 {dimension_numbers = #tpu.dot_dimension_numbers<[1], [0], [0], [1], [0, 0, 1, 1], [], []>} : vector<2x32xbf16>, vector<32x128xbf16>, vector<2x128xf32> -> vector<2x128xf32>
    %127 = vector.broadcast %9 : vector<1x128xf32> to vector<2x128xf32>
    %128 = arith.addf %126, %127 : vector<2x128xf32>
    %129 = vector.extract_strided_slice %124 {offsets = [0, 0], sizes = [2, 32], strides = [1, 1]} : vector<2x128xf32> to vector<2x32xf32>
    %130 = vector.extract_strided_slice %128 {offsets = [0, 0], sizes = [2, 32], strides = [1, 1]} : vector<2x128xf32> to vector<2x32xf32>
    %131 = arith.addf %129, %130 : vector<2x32xf32>
    %132 = arith.negf %131 : vector<2x32xf32>
    %133 = math.exp %132 : vector<2x32xf32>
    %cst_33 = arith.constant 1.000000e+00 : f32
    %134 = vector.broadcast %cst_33 : f32 to vector<2x32xf32>
    %135 = arith.addf %134, %133 : vector<2x32xf32>
    %136 = arith.divf %134, %135 : vector<2x32xf32>
    %137 = vector.extract_strided_slice %124 {offsets = [0, 32], sizes = [2, 32], strides = [1, 1]} : vector<2x128xf32> to vector<2x32xf32>
    %138 = vector.extract_strided_slice %128 {offsets = [0, 32], sizes = [2, 32], strides = [1, 1]} : vector<2x128xf32> to vector<2x32xf32>
    %139 = arith.addf %137, %138 : vector<2x32xf32>
    %140 = arith.negf %139 : vector<2x32xf32>
    %141 = math.exp %140 : vector<2x32xf32>
    %cst_34 = arith.constant 1.000000e+00 : f32
    %142 = vector.broadcast %cst_34 : f32 to vector<2x32xf32>
    %143 = arith.addf %142, %141 : vector<2x32xf32>
    %144 = arith.divf %142, %143 : vector<2x32xf32>
    %145 = vector.extract_strided_slice %124 {offsets = [0, 64], sizes = [2, 32], strides = [1, 1]} : vector<2x128xf32> to vector<2x32xf32>
    %146 = vector.extract_strided_slice %128 {offsets = [0, 64], sizes = [2, 32], strides = [1, 1]} : vector<2x128xf32> to vector<2x32xf32>
    %147 = arith.mulf %136, %146 : vector<2x32xf32>
    %148 = arith.addf %145, %147 : vector<2x32xf32>
    %149 = math.tanh %148 : vector<2x32xf32>
    %cst_35 = arith.constant 1.000000e+00 : f32
    %150 = vector.broadcast %cst_35 : f32 to vector<2x32xf32>
    %151 = arith.subf %150, %144 : vector<2x32xf32>
    %152 = arith.mulf %151, %149 : vector<2x32xf32>
    %153 = arith.mulf %144, %123 : vector<2x32xf32>
    %154 = arith.addf %152, %153 : vector<2x32xf32>
    %155 = arith.truncf %154 : vector<2x32xf32> to vector<2x32xbf16>
    %cst_36 = arith.constant dense<0.000000e+00> : vector<2x32xf32>
    %156 = tpu.matmul %155, %4, %cst_36 {dimension_numbers = #tpu.dot_dimension_numbers<[1], [0], [0], [1], [0, 0, 1, 1], [], []>} : vector<2x32xbf16>, vector<32x32xbf16>, vector<2x32xf32> -> vector<2x32xf32>
    %157 = vector.broadcast %10 : vector<1x32xf32> to vector<2x32xf32>
    %158 = arith.addf %156, %157 : vector<2x32xf32>
    %cst_37 = arith.constant 0.000000e+00 : f32
    %159 = vector.broadcast %cst_37 : f32 to vector<2x32xf32>
    %160 = arith.cmpf oge, %158, %159 : vector<2x32xf32>
    %cst_38 = arith.constant 0.00999999977 : f32
    %161 = vector.broadcast %cst_38 : f32 to vector<2x32xf32>
    %162 = arith.mulf %161, %158 : vector<2x32xf32>
    %163 = arith.select %160, %158, %162 : vector<2x32xi1>, vector<2x32xf32>
    %164 = arith.truncf %163 : vector<2x32xf32> to vector<2x32xbf16>
    %cst_39 = arith.constant dense<0.000000e+00> : vector<2x4xf32>
    %165 = tpu.matmul %164, %5, %cst_39 {dimension_numbers = #tpu.dot_dimension_numbers<[1], [0], [0], [1], [0, 0, 1, 1], [], []>} : vector<2x32xbf16>, vector<32x4xbf16>, vector<2x4xf32> -> vector<2x4xf32>
    %166 = vector.broadcast %11 : vector<1x4xf32> to vector<2x4xf32>
    %167 = arith.addf %165, %166 : vector<2x4xf32>
    %cst_40 = arith.constant dense<0xFF800000> : vector<2xf32>
    %168 = vector.multi_reduction <maximumf>, %167, %cst_40 [1] : vector<2x4xf32> to vector<2xf32>
    %169 = vector.shape_cast %168 : vector<2xf32> to vector<2x1xf32>
    %170 = vector.broadcast %169 : vector<2x1xf32> to vector<2x4xf32>
    %171 = arith.subf %167, %170 : vector<2x4xf32>
    %172 = math.exp %171 : vector<2x4xf32>
    %cst_41 = arith.constant dense<0.000000e+00> : vector<2xf32>
    %173 = vector.multi_reduction <add>, %172, %cst_41 [1] : vector<2x4xf32> to vector<2xf32>
    %174 = vector.shape_cast %173 : vector<2xf32> to vector<2x1xf32>
    %175 = tpu.reciprocal %174 {approx = true} : vector<2x1xf32> -> vector<2x1xf32>
    %176 = vector.broadcast %175 : vector<2x1xf32> to vector<2x4xf32>
    %177 = arith.mulf %172, %176 : vector<2x4xf32>
    %c0_42 = arith.constant 0 : index
    %c0_43 = arith.constant 0 : index
    %178 = vector.load %arg3[%c0_42, %c0_43] : memref<2x4xf32, #tpu.memory_space<vmem>>, vector<2x4xf32>
    tpu.vector_store %arg3[%c0_42, %c0_43], %177 {strides = array<i32>} : memref<2x4xf32, #tpu.memory_space<vmem>>, vector<2x4xf32>,
    return
  }
}

</mosaic_0001>

<bundles_post_ra>
// kernel: dqn_forward.1
= control target key start
LH: loop header
LB: loop body
LE: loop exit
PB: predicated region body
PF: predicated region fallthrough
CT: control target
= control target key end

     0   :  { %8 = vsyncpa [#allocation3], 0  ;;  %s1104_s0 = inlined_call_operand.hbm [shape: bf16[8,16], index: 0, kind: input, shape index: {}]   ;;  %s1105_s1 = inlined_call_operand.hbm [shape: bf16[176,128], index: 1, kind: input, shape index: {}]   ;;  %s1106_s2 = inlined_call_operand.hbm [shape: f32[8,128], index: 2, kind: input, shape index: {}]   ;;  %s1107_s3 = inlined_call_operand.hbm [shape: f32[2,4], index: 3, kind: output, shape index: {}]  }
   0x1   :  { %9 = vsyncpa [#allocation6], 0 }
   0x2   :  { %10 = vsyncpa [#allocation4], 0  ;;  %s951_s12 = smov [#allocation5]   ;;  %s857_s16 = scalar_lea.hbm %s1105_s1, 1408 }
   0x3   :  { %s26_s13 = sshll.u32 %s951_s12, 4  ;;  %p858_p0 = scmp.ne.s32.totalorder %s1105_s1, %s857_s16  ;;  %s27_s13 = int_to_ptr.vmem [resolvable:$true] %s26_s13 }
   0x4   :  { %p861_p1 = scmp.lt.u32.totalorder %s857_s16, %s1105_s1 }
   0x6   :  { %p863_p2 = pnand %p861_p1, %p858_p0 }
   0x8   :  { %866 = shalt.err (!%p863_p2)
}
   0x9   :  { %s867_s21 = scalar_lea.vmem %s27_s13, 1408  ;;  %p872_p4 = scmp.lt.s32.totalorder %s27_s13, %s27_s13 }
   0xa   :  { %p868_p3 = scmp.ne.s32.totalorder %s27_s13, %s867_s21  ;;  %p873_p5 = scmp.lt.s32.totalorder %s867_s21, %s867_s21 }
   0xc   :  { %p874_p6 = por %p873_p5, %p872_p4 }
   0xe   :  { %p875_p7 = pnand %p874_p6, %p868_p3 }
  0x10   :  { %878 = shalt.err (!%p875_p7)
}
  0x11   :  { %s952_s22 = smov 64   ;;  %s953_s23 = smov 4  }
  0x12   :  { %32 = dma.hbm_to_vmem [thread:$0]  %s1105_s1, 1408, %s27_s13, [#allocation6], %s952_s22, %s952_s22, %s953_s23  }
  0x13   :  { %s954_s26 = smov [#allocation2]   ;;  %s955_s28 = smov [#allocation7]  }
  0x14   :  { %s17_s27 = sshll.u32 %s954_s26, 4  ;;  %s39_s29 = sshll.u32 %s955_s28, 4  ;;  %s18_s27 = int_to_ptr.vmem [resolvable:$true] %s17_s27  ;;  %s40_s29 = int_to_ptr.vmem [resolvable:$true] %s39_s29 }
  0x15   :  { %s879_s5 = scalar_lea.hbm %s1104_s0, 64 }
  0x16   :  { %p880_p8 = scmp.ne.s32.totalorder %s1104_s0, %s879_s5  ;;  %p883_p9 = scmp.lt.u32.totalorder %s879_s5, %s1104_s0 }
  0x18   :  { %p885_p10 = pnand %p883_p9, %p880_p8 }
  0x1a   :  { %888 = shalt.err (!%p885_p10)
}
  0x1b   :  { %s889_s1 = scalar_lea.vmem %s18_s27, 64  ;;  %p894_p12 = scmp.lt.s32.totalorder %s18_s27, %s18_s27 }
  0x1c   :  { %p890_p11 = scmp.ne.s32.totalorder %s18_s27, %s889_s1  ;;  %p895_p13 = scmp.lt.s32.totalorder %s889_s1, %s889_s1 }
  0x1e   :  { %p896_p0 = por %p895_p13, %p894_p12 }
  0x20   :  { %p897_p1 = pnand %p896_p0, %p890_p11 }
  0x22   :  { %900 = shalt.err (!%p897_p1)
}
  0x23   :  { %20 = dma.hbm_to_vmem [thread:$0]  %s1104_s0, 64, %s18_s27, [#allocation3]  }
  0x24   :  { %s901_s14 = scalar_lea.hbm %s1106_s2, 128 }
  0x25   :  { %p902_p2 = scmp.ne.s32.totalorder %s1106_s2, %s901_s14  ;;  %p905_p3 = scmp.lt.u32.totalorder %s901_s14, %s1106_s2 }
  0x27   :  { %p907_p4 = pnand %p905_p3, %p902_p2 }
  0x29   :  { %910 = shalt.err (!%p907_p4)
}
  0x2a   :  { %s911_s19 = scalar_lea.vmem %s40_s29, 128  ;;  %p916_p6 = scmp.lt.s32.totalorder %s40_s29, %s40_s29 }
  0x2b   :  { %p912_p5 = scmp.ne.s32.totalorder %s40_s29, %s911_s19  ;;  %p917_p7 = scmp.lt.s32.totalorder %s911_s19, %s911_s19 }
  0x2d   :  { %p918_p8 = por %p917_p7, %p916_p6 }
  0x2f   :  { %p919_p9 = pnand %p918_p8, %p912_p5 }
  0x31   :  { %922 = shalt.err (!%p919_p9)
}
  0x32   :  { %42 = dma.hbm_to_vmem [thread:$0]  %s1106_s2, 128, %s40_s29, [#allocation6]  }
  0x33   :  { %945 = dma.done.wait [#allocation3], 64  }
  0x34   :  { %946 = vsyncadd [#allocation3], 4294967232 }
  0x35   :  { %947 = dma.done.wait [#allocation6], 1536  }
  0x36   :  { %948 = vsyncadd [#allocation6], 4294965760  ;;  %v956_v0 = vmov 0.0   ;;  %vm957_vm0 = vmmov 0   ;;  %v818_v1 = vld [vmem:[#allocation5] sm:$0xff]   ;;  %vm92_vm1 = vcmask 130048  }
  0x37   :  { %747 = vmatprep.subr.bf16.mxu0 %v956_v0  ;;  %749 = vmatprep.mubr.msk.bf16.mxu0 %vm957_vm0, %v956_v0  ;;  %v81_v2 = vld [vmem:[#allocation2] sm:$0xf]  ;;  %v819_v3 = vld [vmem:[#allocation5 + $0x8] sm:$0xff]   ;;  %v820_v4 = vld [vmem:[#allocation5 + $0x10] sm:$0xff]   ;;  %vm156_vm3 = vcmask 261120   ;;  %s958_s2 = smov 96  }
  0x38   :  { %753 = vmatprep.subr.bf16.mxu1 %v956_v0  ;;  %757 = vmatprep.mubr.msk.bf16.mxu1 %vm957_vm0, %v956_v0  ;;  %v695_v5 = vld [vmem:[#allocation7] ss:$0 sm:$0xff]  ;;  %v822_v15 = vld [vmem:[#allocation5 + $0x20] sm:$0xff]   ;;  %v1034_v16 = vld [vmem:[#allocation7 + $0x3] ss:$0 sm:$0xff]  ;;  %vm666_vm6 = vcmask 25600  }
  0x39   :  { %748 = vmatpush3.bf16.msra.mxu0 %v818_v1  ;;  %754 = vmatpush3.bf16.msra.mxu1 %v819_v3  ;;  %v821_v14 = vld [vmem:[#allocation5 + $0x18] sm:$0xff]   ;;  %v823_v41 = vld [vmem:[#allocation5 + $0x28] sm:$0xff]   ;;  %v824_v42 = vld [vmem:[#allocation5 + $0x30] sm:$0xff]   ;;  %s959_s21 = smov [#allocation8]  }
  0x3a   :  { %761 = vmatprep.subr.bf16.mxu0 %v956_v0  ;;  %755 = vmatprep.subr.bf16.mxu1 %v956_v0  ;;  %v698_v17 = vld [vmem:[#allocation7 + $0x1] ss:$0 sm:$0xff]  ;;  %v702_v26 = vld [vmem:[#allocation7 + $0x2] ss:$0 sm:$0xff] }
  0x3b   :  { %275 = vrot.lane.b32.xlu0 %v1034_v16, %s952_s22 }
  0x3c   :  { %750 = vmatmul.mubr.msk.bf16.vlgmr.msra.gmra.mrb[0].mxu0 %vm92_vm1, %v81_v2 }
  0x3d   :  { %765 = vmatprep.mubr.msk.bf16.mxu0 %vm957_vm0, %v956_v0  ;;  %756 = vmatpush3.bf16.msra.mxu1 %v820_v4 }
  0x3e   :  { %769 = vmatprep.subr.bf16.mxu1 %v956_v0  ;;  %762 = vmatpush3.bf16.msra.mxu0 %v821_v14 }
  0x3f   :  { %763 = vmatprep.subr.bf16.mxu0 %v956_v0 }
  0x42   :  { %764 = vmatpush3.bf16.msra.mxu0 %v822_v15 }
  0x43   :  { %777 = vmatprep.subr.bf16.mxu0 %v956_v0 }
  0xad   :  { %v276_v36 = vpop.permute.xlu0 %275 }
 0x10f   :  { %v130_v6 = vpop.f32.mrb[0].mxu0 }
 0x110   :  { %v131_v7 = vadd.f32 %v695_v5, %v130_v6  ;;  %v751_v8 = vpop.f32.mrb[1].mxu0 }
 0x111   :  { %v133_v9 = vpop.f32.mrb[2].mxu0 }
 0x112   :  { %vm136_vm2 = vcmp.ge.f32.partialorder %v131_v7, 0.0  ;;  %v137_v10 = vmul.f32 0.01, %v131_v7  ;;  %v752_v11 = vpop.f32.mrb[3].mxu0 }
 0x114   :  { %v138_v12 = vsel %vm136_vm2, %v131_v7, %v137_v10 }
 0x115   :  { %v139_v13 = vpack.c.bf16 %v138_v12, %v138_v12 }
 0x117   :  { %758 = vmatmul.mubr.msk.bf16.vlgmr.msra.gmra.mrb[0].mxu1 %vm156_vm3, %v139_v13 }
 0x118   :  { %773 = vmatprep.mubr.msk.bf16.mxu1 %vm957_vm0, %v956_v0  ;;  %770 = vmatpush3.bf16.msra.mxu1 %v823_v41 }
 0x119   :  { %771 = vmatprep.subr.bf16.mxu1 %v956_v0 }
 0x11c   :  { %772 = vmatpush3.bf16.msra.mxu1 %v824_v42 }
 0x11d   :  { %785 = vmatprep.subr.bf16.mxu1 %v956_v0 }
 0x1ea   :  { %v194_v18 = vpop.f32.mrb[0].mxu1 }
 0x1eb   :  { %v195_v19 = vadd.f32 %v698_v17, %v194_v18  ;;  %v759_v20 = vpop.f32.mrb[1].mxu1 }
 0x1ec   :  { %v197_v21 = vpop.f32.mrb[2].mxu1 }
 0x1ed   :  { %vm200_vm4 = vcmp.ge.f32.partialorder %v195_v19, 0.0  ;;  %v201_v22 = vmul.f32 0.01, %v195_v19  ;;  %v760_v23 = vpop.f32.mrb[3].mxu1 }
 0x1ef   :  { %v202_v24 = vsel %vm200_vm4, %v195_v19, %v201_v22 }
 0x1f0   :  { %v203_v25 = vpack.c.bf16 %v202_v24, %v202_v24 }
 0x1f2   :  { %766 = vmatmul.mubr.msk.bf16.vlgmr.msra.gmra.mrb[4].mxu0 %vm156_vm3, %v203_v25 }
 0x1f3   :  { %781 = vmatprep.mubr.msk.bf16.mxu0 %vm957_vm0, %v956_v0  ;;  %778 = vmatpush3.bf16.msra.mxu0 %v823_v41 }
 0x1f4   :  { %779 = vmatprep.subr.bf16.mxu0 %v956_v0 }
 0x1f7   :  { %780 = vmatpush3.bf16.msra.mxu0 %v824_v42 }
 0x1f8   :  { %793 = vmatprep.subr.bf16.mxu0 %v956_v0 }
 0x2c5   :  { %v257_v27 = vpop.f32.mrb[4].mxu0 }
 0x2c6   :  { %v1041_v28 = vadd.f32 %v702_v26, %v257_v27  ;;  %v767_v29 = vpop.f32.mrb[5].mxu0 }
 0x2c7   :  { %v260_v30 = vpop.f32.mrb[6].mxu0 }
 0x2c8   :  { %v768_v31 = vpop.f32.mrb[7].mxu0  ;;  %v267_v32 = vadd.f32 %v1034_v16, %v1041_v28 }
 0x2ca   :  { %v707_v33 = vmul.f32 -1.442695, %v267_v32 }
 0x2cc   :  { %829 = vpow2.f32 %v707_v33 }
 0x2d6   :  { %v830_v34 = vpop.eup %829 }
 0x2d7   :  { %v271_v35 = vadd.f32 1.0, %v830_v34 }
 0x2d9   :  { %831 = vrcp.f32 %v271_v35 }
 0x2e3   :  { %v832_v37 = vpop.eup %831 }
 0x2e4   :  { %v278_v38 = vmul.f32 %v832_v37, %v276_v36  ;;  %v285_v44 = vsub.f32 1.0, %v832_v37 }
 0x2e6   :  { %280 = vrot.lane.b32.xlu0 %v278_v38, %s952_s22 }
 0x358   :  { %v281_v39 = vpop.permute.xlu0 %280 }
 0x359   :  { %v283_v40 = vadd.f32 %v281_v39, %v1041_v28 }
 0x35b   :  { %833 = vtanh.f32 %v283_v40 }
 0x365   :  { %v834_v43 = vpop.eup %833 }
 0x366   :  { %287 = vrot.lane.b32.xlu1 %v834_v43, %s958_s2 }
 0x3d8   :  { %v288_v45 = vpop.permute.xlu1 %287 }
 0x3d9   :  { %v290_v46 = vmul.f32 %v288_v45, %v285_v44 }
 0x3db   :  { %v291_v47 = vpack.c.bf16 %v290_v46, %v290_v46  ;;  %v377_v2 = vrot.slane %v290_v46, 6 }
 0x3dd   :  { %293 = vrot.lane.b32.xlu1 %v291_v47, %s958_s2 }
 0x44f   :  { %v294_v48 = vpop.permute.xlu1 %293 }
 0x450   :  { %774 = vmatmul.mubr.msk.bf16.vlgmr.msra.gmra.mrb[4].mxu1 %vm156_vm3, %v294_v48 }
 0x451   :  { %786 = vmatpush3.bf16.msra.mxu1 %v823_v41  ;;  %789 = vmatprep.mubr.msk.bf16.mxu1 %vm957_vm0, %v956_v0 }
 0x452   :  { %787 = vmatprep.subr.bf16.mxu1 %v956_v0 }
 0x455   :  { %788 = vmatpush3.bf16.msra.mxu1 %v824_v42 }
 0x456   :  { %801 = vmatprep.subr.bf16.mxu1 %v956_v0 }
 0x523   :  { %v344_v49 = vpop.f32.mrb[4].mxu1 }
 0x524   :  { %v345_v50 = vadd.f32 %v1034_v16, %v344_v49  ;;  %v775_v51 = vpop.f32.mrb[5].mxu1 }
 0x525   :  { %v347_v52 = vpop.f32.mrb[6].mxu1 }
 0x526   :  { %v351_v53 = vrot.slane %v345_v50, 6  ;;  %v776_v54 = vpop.f32.mrb[7].mxu1  ;;  %v825_v52 = vld [vmem:[#allocation5 + $0x38] sm:$0xff]  }
 0x528   :  { %360 = vrot.lane.b32.xlu0 %v351_v53, %s952_s22  ;;  %v353_v55 = vadd.f32 %v351_v53, %v1041_v28  ;;  %v826_v53 = vld [vmem:[#allocation5 + $0x40] sm:$0xff]  }
 0x52a   :  { %v711_v56 = vmul.f32 -1.442695, %v353_v55 }
 0x52c   :  { %835 = vpow2.f32 %v711_v56 }
 0x536   :  { %v836_v57 = vpop.eup %835 }
 0x537   :  { %v357_v58 = vadd.f32 1.0, %v836_v57 }
 0x539   :  { %837 = vrcp.f32 %v357_v58 }
 0x543   :  { %v838_v59 = vpop.eup %837 }
 0x544   :  { %v370_v3 = vsub.f32 1.0, %v838_v59  ;;  %v379_v5 = vmul.f32 %v838_v59, %v377_v2  ;;  %v716_v2 = vld [vmem:[#allocation7 + $0x4] ss:$0 sm:$0xff] }
 0x59a   :  { %v361_v60 = vpop.permute.xlu0 %360 }
 0x59b   :  { %v363_v61 = vmul.f32 %v838_v59, %v361_v60 }
 0x59d   :  { %365 = vrot.lane.b32.xlu1 %v363_v61, %s952_s22 }
 0x60f   :  { %v366_v62 = vpop.permute.xlu1 %365 }
 0x610   :  { %v368_v63 = vadd.f32 %v366_v62, %v1041_v28 }
 0x612   :  { %839 = vtanh.f32 %v368_v63  ;;  %v827_v63 = vld [vmem:[#allocation5 + $0x48] sm:$0xff]  }
 0x61c   :  { %v840_v1 = vpop.eup %839 }
 0x61d   :  { %372 = vrot.lane.b32.xlu0 %v840_v1, %s958_s2  ;;  %v828_v1 = vld [vmem:[#allocation5 + $0x50] sm:$0xff]  }
 0x68f   :  { %v373_v4 = vpop.permute.xlu0 %372 }
 0x690   :  { %v375_v6 = vmul.f32 %v373_v4, %v370_v3 }
 0x692   :  { %v380_v7 = vadd.f32 %v379_v5, %v375_v6 }
 0x694   :  { %v381_v8 = vpack.c.bf16 %v380_v7, %v380_v7  ;;  %v456_v29 = vrot.slane %v380_v7, 6 }
 0x696   :  { %v383_v9 = vrot.slane %v381_v8, 1 }
 0x698   :  { %384 = vrot.lane.b32.xlu1 %v383_v9, %s958_s2 }
 0x70a   :  { %v385_v10 = vpop.permute.xlu1 %384 }
 0x70b   :  { %782 = vmatmul.mubr.msk.bf16.vlgmr.msra.gmra.mrb[8].mxu0 %vm156_vm3, %v385_v10 }
 0x70c   :  { %797 = vmatprep.mubr.msk.bf16.mxu0 %vm957_vm0, %v956_v0  ;;  %794 = vmatpush3.bf16.msra.mxu0 %v825_v52 }
 0x70d   :  { %795 = vmatprep.subr.bf16.mxu0 %v956_v0 }
 0x710   :  { %796 = vmatpush3.bf16.msra.mxu0 %v826_v53 }
 0x7de   :  { %v423_v11 = vpop.f32.mrb[8].mxu0 }
 0x7df   :  { %v424_v12 = vadd.f32 %v1034_v16, %v423_v11  ;;  %v783_v13 = vpop.f32.mrb[9].mxu0  ;;  %v720_v11 = vld [vmem:[#allocation7 + $0x5] ss:$0 sm:$0xff] }
 0x7e0   :  { %v426_v14 = vpop.f32.mrb[10].mxu0 }
 0x7e1   :  { %v430_v15 = vrot.slane %v424_v12, 4  ;;  %v784_v17 = vpop.f32.mrb[11].mxu0 }
 0x7e3   :  { %439 = vrot.lane.b32.xlu0 %v430_v15, %s952_s22  ;;  %v432_v18 = vadd.f32 %v430_v15, %v1041_v28 }
 0x7e5   :  { %v713_v19 = vmul.f32 -1.442695, %v432_v18 }
 0x7e7   :  { %841 = vpow2.f32 %v713_v19 }
 0x7f1   :  { %v842_v20 = vpop.eup %841 }
 0x7f2   :  { %v436_v21 = vadd.f32 1.0, %v842_v20 }
 0x7f4   :  { %843 = vrcp.f32 %v436_v21 }
 0x7fe   :  { %v844_v22 = vpop.eup %843 }
 0x7ff   :  { %v449_v30 = vsub.f32 1.0, %v844_v22  ;;  %v458_v32 = vmul.f32 %v844_v22, %v456_v29 }
 0x855   :  { %v440_v23 = vpop.permute.xlu0 %439 }
 0x856   :  { %v442_v24 = vmul.f32 %v844_v22, %v440_v23 }
 0x858   :  { %444 = vrot.lane.b32.xlu1 %v442_v24, %s952_s22 }
 0x8ca   :  { %v445_v25 = vpop.permute.xlu1 %444 }
 0x8cb   :  { %v447_v26 = vadd.f32 %v445_v25, %v1041_v28 }
 0x8cd   :  { %845 = vtanh.f32 %v447_v26 }
 0x8d7   :  { %v846_v27 = vpop.eup %845 }
 0x8d8   :  { %451 = vrot.lane.b32.xlu0 %v846_v27, %s958_s2 }
 0x94a   :  { %v452_v31 = vpop.permute.xlu0 %451 }
 0x94b   :  { %v454_v33 = vmul.f32 %v452_v31, %v449_v30 }
 0x94d   :  { %v459_v34 = vadd.f32 %v458_v32, %v454_v33 }
 0x94f   :  { %v460_v35 = vpack.c.bf16 %v459_v34, %v459_v34  ;;  %v535_v55 = vrot.slane %v459_v34, 6 }
 0x951   :  { %v462_v36 = vrot.slane %v460_v35, 2 }
 0x953   :  { %463 = vrot.lane.b32.xlu1 %v462_v36, %s958_s2 }
 0x9c5   :  { %v464_v37 = vpop.permute.xlu1 %463 }
 0x9c6   :  { %790 = vmatmul.mubr.msk.bf16.vlgmr.msra.gmra.mrb[8].mxu1 %vm156_vm3, %v464_v37 }
 0x9c7   :  { %805 = vmatprep.mubr.msk.bf16.mxu1 %vm957_vm0, %v956_v0  ;;  %802 = vmatpush3.bf16.msra.mxu1 %v827_v63 }
 0x9c8   :  { %803 = vmatprep.subr.bf16.mxu1 %v956_v0 }
 0x9cb   :  { %804 = vmatpush3.bf16.msra.mxu1 %v828_v1 }
 0xa99   :  { %v502_v38 = vpop.f32.mrb[8].mxu1 }
 0xa9a   :  { %v503_v39 = vadd.f32 %v1034_v16, %v502_v38  ;;  %v791_v40 = vpop.f32.mrb[9].mxu1 }
 0xa9b   :  { %v505_v41 = vpop.f32.mrb[10].mxu1 }
 0xa9c   :  { %v509_v42 = vrot.slane %v503_v39, 2  ;;  %v792_v43 = vpop.f32.mrb[11].mxu1 }
 0xa9e   :  { %518 = vrot.lane.b32.xlu0 %v509_v42, %s952_s22  ;;  %v511_v44 = vadd.f32 %v509_v42, %v1041_v28 }
 0xaa0   :  { %v715_v45 = vmul.f32 -1.442695, %v511_v44 }
 0xaa2   :  { %847 = vpow2.f32 %v715_v45 }
 0xaac   :  { %v848_v46 = vpop.eup %847 }
 0xaad   :  { %v515_v47 = vadd.f32 1.0, %v848_v46 }
 0xaaf   :  { %849 = vrcp.f32 %v515_v47 }
 0xab9   :  { %v850_v48 = vpop.eup %849 }
 0xaba   :  { %v528_v56 = vsub.f32 1.0, %v850_v48  ;;  %v537_v58 = vmul.f32 %v850_v48, %v535_v55 }
 0xb10   :  { %v519_v49 = vpop.permute.xlu0 %518 }
 0xb11   :  { %v521_v50 = vmul.f32 %v850_v48, %v519_v49 }
 0xb13   :  { %523 = vrot.lane.b32.xlu1 %v521_v50, %s952_s22  ;;  %s685_s22 = sshll.u32 %s959_s21, 4  ;;  %s686_s22 = int_to_ptr.vmem [resolvable:$true] %s685_s22 }
 0xb14   :  { %s923_s23 = scalar_lea.vmem %s686_s22, 32  ;;  %p928_p11 = scmp.lt.s32.totalorder %s686_s22, %s686_s22 }
 0xb15   :  { %p924_p10 = scmp.ne.s32.totalorder %s686_s22, %s923_s23  ;;  %p929_p12 = scmp.lt.s32.totalorder %s923_s23, %s923_s23 }
 0xb17   :  { %p930_p13 = por %p929_p12, %p928_p11 }
 0xb19   :  { %p931_p0 = pnand %p930_p13, %p924_p10 }
 0xb85   :  { %v524_v51 = vpop.permute.xlu1 %523 }
 0xb86   :  { %v526_v16 = vadd.f32 %v524_v51, %v1041_v28 }
 0xb88   :  { %851 = vtanh.f32 %v526_v16 }
 0xb92   :  { %v852_v54 = vpop.eup %851 }
 0xb93   :  { %530 = vrot.lane.b32.xlu0 %v852_v54, %s958_s2 }
 0xc05   :  { %v531_v57 = vpop.permute.xlu0 %530 }
 0xc06   :  { %v533_v59 = vmul.f32 %v531_v57, %v528_v56 }
 0xc08   :  { %v538_v60 = vadd.f32 %v537_v58, %v533_v59 }
 0xc0a   :  { %v539_v61 = vpack.c.bf16 %v538_v60, %v538_v60 }
 0xc0c   :  { %v545_v62 = vrot.slane %v539_v61, 3 }
 0xc0e   :  { %546 = vrot.lane.b32.xlu1 %v545_v62, %s958_s2 }
 0xc80   :  { %v547_v28 = vpop.permute.xlu1 %546 }
 0xc81   :  { %798 = vmatmul.mubr.msk.bf16.vlgmr.msra.gmra.mrb[12].mxu0 %vm156_vm3, %v547_v28 }
 0xd54   :  { %v597_v3 = vpop.f32.mrb[12].mxu0 }
 0xd55   :  { %v598_v4 = vadd.f32 %v716_v2, %v597_v3  ;;  %v799_v5 = vpop.f32.mrb[13].mxu0 }
 0xd56   :  { %v600_v6 = vpop.f32.mrb[14].mxu0 }
 0xd57   :  { %vm603_vm5 = vcmp.ge.f32.partialorder %v598_v4, 0.0  ;;  %v604_v7 = vmul.f32 0.01, %v598_v4  ;;  %v800_v8 = vpop.f32.mrb[15].mxu0 }
 0xd59   :  { %v605_v9 = vsel %vm603_vm5, %v598_v4, %v604_v7 }
 0xd5a   :  { %v606_v10 = vpack.c.bf16 %v605_v9, %v605_v9 }
 0xd5c   :  { %806 = vmatmul.mubr.msk.bf16.vlgmr.msra.gmra.mrb[12].mxu1 %vm156_vm3, %v606_v10 }
 0xe2f   :  { %v660_v12 = vpop.f32.mrb[12].mxu1 }
 0xe30   :  { %v661_v13 = vadd.f32 %v720_v11, %v660_v12  ;;  %v807_v14 = vpop.f32.mrb[13].mxu1 }
 0xe31   :  { %v663_v0 = vpop.f32.mrb[14].mxu1 }
 0xe32   :  { %v808_v15 = vpop.f32.mrb[15].mxu1  ;;  %v667_v17 = vsel %vm666_vm6, %v661_v13, -inf }
 0xe33   :  { %668 = vmax.xlane.f32.xlu0 %v667_v17 }
 0xec0   :  { %v669_v18 = vpop.xlane.xlu0 %668 }
 0xec1   :  { %v670_v19 = vsub.f32 %v661_v13, %v669_v18 }
 0xec3   :  { %v671_v20 = vmul.f32 1.442695, %v670_v19 }
 0xec5   :  { %853 = vpow2.f32 %v671_v20 }
 0xecf   :  { %v854_v21 = vpop.eup %853 }
 0xed0   :  { %v673_v22 = vsel %vm666_vm6, %v854_v21, 0.0 }
 0xed1   :  { %674 = vadd.xlane.f32.xlu1 %v673_v22 }
 0xf5e   :  { %v675_v23 = vpop.xlane.xlu1 %674 }
 0xf5f   :  { %855 = vrcp.f32 %v675_v23 }
 0xf69   :  { %v856_v24 = vpop.eup %855 }
 0xf6a   :  { %v677_v25 = vmul.f32 %v856_v24, %v854_v21 }
 0xf6c   :  { %678 = vst.msk [vmem:[#allocation8] sm:$0x3] %vm666_vm6, %v677_v25 }
 0xf6d   :  { %934 = shalt.err (!%p931_p0)
}
 0xf6e   :  { %s935_s26 = scalar_lea.hbm %s1107_s3, 32 }
 0xf6f   :  { %p936_p1 = scmp.ne.s32.totalorder %s1107_s3, %s935_s26  ;;  %p939_p2 = scmp.lt.u32.totalorder %s935_s26, %s1107_s3 }
 0xf71   :  { %p941_p3 = pnand %p939_p2, %p936_p1 }
 0xf73   :  { %944 = shalt.err (!%p941_p3)
}
 0xf74   :  { %688 = dma.vmem_to_hbm [thread:$0]  %s686_s22, 32, %s1107_s3, [#allocation4]  }
 0xf75   :  { %949 = dma.done.wait [#allocation4], 32  }
 0xf76   :  { %950 = vsyncadd [#allocation4], 4294967264 }
 0xf77   :  { %692 = vsyncpa [#allocation3], 1 }
 0xf78   :  { %693 = vsyncpa [#allocation6], 1 }
 0xf79   :  { %694 = vsyncpa [#allocation4], 1 }

</bundles_post_ra>
